<compile_context>
chip_gen: v6e
topology: v6e:2x2x1
jax: 0.10.0
libtpu: 0.0.40
codegen_flags: <defaults>
</compile_context>

<pallas_src>
import functools
import math

import jax
import jax.numpy as jnp
from jax.experimental import pallas as pl
from jax.experimental.pallas import tpu as pltpu


def mha_kernel(x_ref, mask_ref, wqkv_ref, bqkv_ref, wo_ref, bo_ref, out_ref,
               *, n_heads, head_size, inv_scale):
    """One grid step == one batch row. Blocks:
       x_ref:    (1, S, E)   mask_ref: (1, 1, S)
       wqkv_ref: (E, 3E)     bqkv_ref: (1, 3E)
       wo_ref:   (E, E)      bo_ref:   (1, E)
       out_ref:  (1, S, E)
    """
    E = n_heads * head_size
    x = x_ref[0]                                    # (S, E)
    mask = mask_ref[0]                              # (1, S) int32

    # Fused Q/K/V projection for all heads: one MXU matmul.
    qkv = jnp.dot(x, wqkv_ref[...],
                  preferred_element_type=jnp.float32) + bqkv_ref[...]   # (S, 3E)
    q = qkv[:, 0 * E:1 * E]
    k = qkv[:, 1 * E:2 * E]
    v = qkv[:, 2 * E:3 * E]

    neg_big = jnp.float32(-1e9)
    ctx_heads = []
    for h in range(n_heads):                        # static unrolled loop over heads
        sl = slice(h * head_size, (h + 1) * head_size)
        qh = q[:, sl]                               # (S, hs)
        kh = k[:, sl]                               # (S, hs)
        vh = v[:, sl]                               # (S, hs)

        w = jnp.dot(qh, kh.T,
                    preferred_element_type=jnp.float32) * inv_scale     # (S, S)
        w = jnp.where(mask == 0, neg_big, w)        # (1,S) broadcasts over query dim

        # numerically-stable softmax over the key dim
        w = w - jnp.max(w, axis=-1, keepdims=True)
        p = jnp.exp(w)
        p = p / jnp.sum(p, axis=-1, keepdims=True)
        # TODO(synk): attention-prob dropout (training mode) omitted (identity in eval).

        ctx_heads.append(jnp.dot(p, vh, preferred_element_type=jnp.float32))

    ctx = jnp.concatenate(ctx_heads, axis=-1)       # (S, E)

    out = jnp.dot(ctx, wo_ref[...],
                  preferred_element_type=jnp.float32) + bo_ref[...]     # (S, E)
    out_ref[0] = out.astype(out_ref.dtype)


def bert_self_attention(x, mask, w_qkv, b_qkv, w_o, b_o, *, n_heads):
    """x: (B, S, E) f32, mask: (B, S) int32 (1 = keep, 0 = mask out)."""
    B, S, E = x.shape
    assert E % n_heads == 0
    head_size = E // n_heads
    assert w_qkv.shape == (E, 3 * E)
    assert w_o.shape == (E, E)

    mask3 = mask.astype(jnp.int32).reshape(B, 1, S)
    b_qkv2 = b_qkv.reshape(1, 3 * E).astype(jnp.float32)
    b_o2 = b_o.reshape(1, E).astype(jnp.float32)

    kernel = functools.partial(
        mha_kernel,
        n_heads=n_heads,
        head_size=head_size,
        inv_scale=1.0 / math.sqrt(E),               # spec divides by sqrt(n_embed)
    )

    # Advisory cost estimate: bandwidth-light, a handful of small GEMMs per row.
    flops = B * (2 * S * E * 3 * E            # fused qkv projection
                 + n_heads * (2 * S * S * head_size) * 2   # qk^T and p@v
                 + 2 * S * E * E)             # output projection
    bytes_accessed = 4 * (x.size + mask3.size + w_qkv.size + b_qkv2.size
                          + w_o.size + b_o2.size + B * S * E)
    cost = pl.CostEstimate(flops=flops,
                           transcendentals=B * n_heads * S * S,
                           bytes_accessed=bytes_accessed)

    return pl.pallas_call(
        kernel,
        out_shape=jax.ShapeDtypeStruct((B, S, E), jnp.float32),
        grid_spec=pltpu.PrefetchScalarGridSpec(
            num_scalar_prefetch=0,
            grid=(B,),
            in_specs=[
                pl.BlockSpec((1, S, E), lambda b: (b, 0, 0)),      # x row
                pl.BlockSpec((1, 1, S), lambda b: (b, 0, 0)),      # mask row
                pl.BlockSpec((E, 3 * E), lambda b: (0, 0)),        # fused Wq|Wk|Wv
                pl.BlockSpec((1, 3 * E), lambda b: (0, 0)),        # fused bq|bk|bv
                pl.BlockSpec((E, E), lambda b: (0, 0)),            # Wo
                pl.BlockSpec((1, E), lambda b: (0, 0)),            # bo
            ],
            out_specs=pl.BlockSpec((1, S, E), lambda b: (b, 0, 0)),
        ),
        compiler_params=pltpu.CompilerParams(
            dimension_semantics=("parallel",)),
        cost_estimate=cost,
    )(x.astype(jnp.float32), mask3, w_qkv.astype(jnp.float32), b_qkv2,
      w_o.astype(jnp.float32), b_o2)


def reference_self_attention(x, mask, w_qkv, b_qkv, w_o, b_o, *, n_heads):
    """Pure-JAX reference mirroring the PyTorch module (eval mode)."""
    B, S, E = x.shape
    head_size = E // n_heads
    qkv = x @ w_qkv + b_qkv                       # (B, S, 3E)
    q, k, v = qkv[..., :E], qkv[..., E:2 * E], qkv[..., 2 * E:]
    ctxs = []
    for h in range(n_heads):
        sl = slice(h * head_size, (h + 1) * head_size)
        qh, kh, vh = q[..., sl], k[..., sl], v[..., sl]
        w = jnp.einsum('bqd,bkd->bqk', qh, kh) / math.sqrt(E)
        w = jnp.where(mask[:, None, :] == 0, -1e9, w)
        p = jax.nn.softmax(w, axis=-1)
        ctxs.append(jnp.einsum('bqk,bkd->bqd', p, vh))
    ctx = jnp.concatenate(ctxs, axis=-1)
    return ctx @ w_o + b_o


if __name__ == "__main__":
    batch, seq_len, n_embed, n_heads = 2, 16, 32, 4

    key = jax.random.PRNGKey(0)
    k_x, k_wqkv, k_bqkv, k_wo, k_bo, k_mask = jax.random.split(key, 6)

    x = jax.random.normal(k_x, (batch, seq_len, n_embed), jnp.float32)

    # Fused per-head projection weights, laid out head-major so kernel slices match.
    w_qkv = jax.random.normal(k_wqkv, (n_embed, 3 * n_embed), jnp.float32) * 0.1
    b_qkv = jax.random.normal(k_bqkv, (3 * n_embed,), jnp.float32) * 0.1
    w_o = jax.random.normal(k_wo, (n_embed, n_embed), jnp.float32) * 0.1
    b_o = jax.random.normal(k_bo, (n_embed,), jnp.float32) * 0.1

    # Padding-style mask (1 = attend, 0 = masked); keep token 0 always valid.
    mask = (jax.random.uniform(k_mask, (batch, seq_len)) > 0.25).astype(jnp.int32)
    mask = mask.at[:, 0].set(1)

    out = bert_self_attention(x, mask, w_qkv, b_qkv, w_o, b_o, n_heads=n_heads)
    out = jax.block_until_ready(out)

    ref = reference_self_attention(x, mask, w_qkv, b_qkv, w_o, b_o, n_heads=n_heads)

    assert out.shape == (batch, seq_len, n_embed)
    assert jnp.allclose(out, ref, atol=1e-4, rtol=1e-4), "mismatch vs reference"

    print("KERNEL_OK")
</pallas_src>

<mosaic_0001>
module attributes {stable_mosaic.version = 11 : i64} {
  func.func @mha_kernel(%arg0: i32, %arg1: memref<1x16x32xf32, #tpu.memory_space<vmem>>, %arg2: memref<1x1x16xi32, #tpu.memory_space<vmem>>, %arg3: memref<32x96xf32, #tpu.memory_space<vmem>>, %arg4: memref<1x96xf32, #tpu.memory_space<vmem>>, %arg5: memref<32x32xf32, #tpu.memory_space<vmem>>, %arg6: memref<1x32xf32, #tpu.memory_space<vmem>>, %arg7: memref<1x16x32xf32, #tpu.memory_space<vmem>>) attributes {dimension_semantics = [#tpu.dimension_semantics<parallel>], iteration_bounds = array<i64: 2>, scalar_prefetch = 0 : i64, scratch_operands = 0 : i64, tpu.core_type = #tpu.core_type<tc>, window_params = [{transform_indices = @transform_0, window_bounds = array<i64: 1, 16, 32>}, {transform_indices = @transform_1, window_bounds = array<i64: 1, 1, 16>}, {pipeline_mode = #tpu.pipeline_mode<synchronous>, transform_indices = @transform_2, window_bounds = array<i64: 32, 96>}, {pipeline_mode = #tpu.pipeline_mode<synchronous>, transform_indices = @transform_3, window_bounds = array<i64: 1, 96>}, {pipeline_mode = #tpu.pipeline_mode<synchronous>, transform_indices = @transform_4, window_bounds = array<i64: 32, 32>}, {pipeline_mode = #tpu.pipeline_mode<synchronous>, transform_indices = @transform_5, window_bounds = array<i64: 1, 32>}, {transform_indices = @transform_6, window_bounds = array<i64: 1, 16, 32>}]} {
    %c0 = arith.constant 0 : index
    %c0_0 = arith.constant 0 : index
    %c0_1 = arith.constant 0 : index
    %0 = vector.load %arg1[%c0, %c0_0, %c0_1] : memref<1x16x32xf32, #tpu.memory_space<vmem>>, vector<1x16x32xf32>
    %1 = vector.shape_cast %0 : vector<1x16x32xf32> to vector<16x32xf32>
    %c0_2 = arith.constant 0 : index
    %c0_3 = arith.constant 0 : index
    %c0_4 = arith.constant 0 : index
    %2 = vector.load %arg2[%c0_2, %c0_3, %c0_4] : memref<1x1x16xi32, #tpu.memory_space<vmem>>, vector<1x1x16xi32>
    %3 = vector.shape_cast %2 : vector<1x1x16xi32> to vector<1x16xi32>
    %c0_5 = arith.constant 0 : index
    %c0_6 = arith.constant 0 : index
    %4 = vector.load %arg3[%c0_5, %c0_6] : memref<32x96xf32, #tpu.memory_space<vmem>>, vector<32x96xf32>
    %cst = arith.constant dense<0.000000e+00> : vector<16x96xf32>
    %5 = tpu.matmul %1, %4, %cst {dimension_numbers = #tpu.dot_dimension_numbers<[1], [0], [0], [1], [0, 0, 1, 1], [], []>} : vector<16x32xf32>, vector<32x96xf32>, vector<16x96xf32> -> vector<16x96xf32>
    %c0_7 = arith.constant 0 : index
    %c0_8 = arith.constant 0 : index
    %6 = vector.load %arg4[%c0_7, %c0_8] : memref<1x96xf32, #tpu.memory_space<vmem>>, vector<1x96xf32>
    %7 = vector.broadcast %6 : vector<1x96xf32> to vector<16x96xf32>
    %8 = arith.addf %5, %7 : vector<16x96xf32>
    %9 = vector.extract_strided_slice %8 {offsets = [0, 0], sizes = [16, 32], strides = [1, 1]} : vector<16x96xf32> to vector<16x32xf32>
    %10 = vector.extract_strided_slice %8 {offsets = [0, 32], sizes = [16, 32], strides = [1, 1]} : vector<16x96xf32> to vector<16x32xf32>
    %11 = vector.extract_strided_slice %8 {offsets = [0, 64], sizes = [16, 32], strides = [1, 1]} : vector<16x96xf32> to vector<16x32xf32>
    %12 = vector.extract_strided_slice %9 {offsets = [0, 0], sizes = [16, 8], strides = [1, 1]} : vector<16x32xf32> to vector<16x8xf32>
    %13 = vector.extract_strided_slice %10 {offsets = [0, 0], sizes = [16, 8], strides = [1, 1]} : vector<16x32xf32> to vector<16x8xf32>
    %14 = vector.extract_strided_slice %11 {offsets = [0, 0], sizes = [16, 8], strides = [1, 1]} : vector<16x32xf32> to vector<16x8xf32>
    %15 = tpu.transpose %13, [1, 0] : vector<16x8xf32> -> vector<8x16xf32>
    %cst_9 = arith.constant dense<0.000000e+00> : vector<16x16xf32>
    %16 = tpu.matmul %12, %15, %cst_9 {dimension_numbers = #tpu.dot_dimension_numbers<[1], [0], [0], [1], [0, 0, 1, 1], [], []>} : vector<16x8xf32>, vector<8x16xf32>, vector<16x16xf32> -> vector<16x16xf32>
    %cst_10 = arith.constant 0.176776692 : f32
    %17 = vector.broadcast %cst_10 : f32 to vector<16x16xf32>
    %18 = arith.mulf %16, %17 : vector<16x16xf32>
    %c0_i32 = arith.constant 0 : i32
    %19 = vector.broadcast %c0_i32 : i32 to vector<1x16xi32>
    %20 = arith.cmpi eq, %3, %19 : vector<1x16xi32>
    %cst_11 = arith.constant -1.000000e+09 : f32
    %21 = vector.shape_cast %20 : vector<1x16xi1> to vector<1x16xi1>
    %22 = vector.broadcast %21 : vector<1x16xi1> to vector<16x16xi1>
    %23 = vector.broadcast %cst_11 : f32 to vector<16x16xf32>
    %24 = arith.select %22, %23, %18 : vector<16x16xi1>, vector<16x16xf32>
    %cst_12 = arith.constant dense<0xFF800000> : vector<16xf32>
    %25 = vector.multi_reduction <maximumf>, %24, %cst_12 [1] : vector<16x16xf32> to vector<16xf32>
    %26 = vector.shape_cast %25 : vector<16xf32> to vector<16x1xf32>
    %27 = vector.broadcast %26 : vector<16x1xf32> to vector<16x16xf32>
    %28 = arith.subf %24, %27 : vector<16x16xf32>
    %29 = math.exp %28 : vector<16x16xf32>
    %cst_13 = arith.constant dense<0.000000e+00> : vector<16xf32>
    %30 = vector.multi_reduction <add>, %29, %cst_13 [1] : vector<16x16xf32> to vector<16xf32>
    %31 = vector.shape_cast %30 : vector<16xf32> to vector<16x1xf32>
    %32 = vector.broadcast %31 : vector<16x1xf32> to vector<16x16xf32>
    %33 = arith.divf %29, %32 : vector<16x16xf32>
    %cst_14 = arith.constant dense<0.000000e+00> : vector<16x8xf32>
    %34 = tpu.matmul %33, %14, %cst_14 {dimension_numbers = #tpu.dot_dimension_numbers<[1], [0], [0], [1], [0, 0, 1, 1], [], []>} : vector<16x16xf32>, vector<16x8xf32>, vector<16x8xf32> -> vector<16x8xf32>
    %35 = vector.extract_strided_slice %9 {offsets = [0, 8], sizes = [16, 8], strides = [1, 1]} : vector<16x32xf32> to vector<16x8xf32>
    %36 = vector.extract_strided_slice %10 {offsets = [0, 8], sizes = [16, 8], strides = [1, 1]} : vector<16x32xf32> to vector<16x8xf32>
    %37 = vector.extract_strided_slice %11 {offsets = [0, 8], sizes = [16, 8], strides = [1, 1]} : vector<16x32xf32> to vector<16x8xf32>
    %38 = tpu.transpose %36, [1, 0] : vector<16x8xf32> -> vector<8x16xf32>
    %cst_15 = arith.constant dense<0.000000e+00> : vector<16x16xf32>
    %39 = tpu.matmul %35, %38, %cst_15 {dimension_numbers = #tpu.dot_dimension_numbers<[1], [0], [0], [1], [0, 0, 1, 1], [], []>} : vector<16x8xf32>, vector<8x16xf32>, vector<16x16xf32> -> vector<16x16xf32>
    %cst_16 = arith.constant 0.176776692 : f32
    %40 = vector.broadcast %cst_16 : f32 to vector<16x16xf32>
    %41 = arith.mulf %39, %40 : vector<16x16xf32>
    %c0_i32_17 = arith.constant 0 : i32
    %42 = vector.broadcast %c0_i32_17 : i32 to vector<1x16xi32>
    %43 = arith.cmpi eq, %3, %42 : vector<1x16xi32>
    %cst_18 = arith.constant -1.000000e+09 : f32
    %44 = vector.shape_cast %43 : vector<1x16xi1> to vector<1x16xi1>
    %45 = vector.broadcast %44 : vector<1x16xi1> to vector<16x16xi1>
    %46 = vector.broadcast %cst_18 : f32 to vector<16x16xf32>
    %47 = arith.select %45, %46, %41 : vector<16x16xi1>, vector<16x16xf32>
    %cst_19 = arith.constant dense<0xFF800000> : vector<16xf32>
    %48 = vector.multi_reduction <maximumf>, %47, %cst_19 [1] : vector<16x16xf32> to vector<16xf32>
    %49 = vector.shape_cast %48 : vector<16xf32> to vector<16x1xf32>
    %50 = vector.broadcast %49 : vector<16x1xf32> to vector<16x16xf32>
    %51 = arith.subf %47, %50 : vector<16x16xf32>
    %52 = math.exp %51 : vector<16x16xf32>
    %cst_20 = arith.constant dense<0.000000e+00> : vector<16xf32>
    %53 = vector.multi_reduction <add>, %52, %cst_20 [1] : vector<16x16xf32> to vector<16xf32>
    %54 = vector.shape_cast %53 : vector<16xf32> to vector<16x1xf32>
    %55 = vector.broadcast %54 : vector<16x1xf32> to vector<16x16xf32>
    %56 = arith.divf %52, %55 : vector<16x16xf32>
    %cst_21 = arith.constant dense<0.000000e+00> : vector<16x8xf32>
    %57 = tpu.matmul %56, %37, %cst_21 {dimension_numbers = #tpu.dot_dimension_numbers<[1], [0], [0], [1], [0, 0, 1, 1], [], []>} : vector<16x16xf32>, vector<16x8xf32>, vector<16x8xf32> -> vector<16x8xf32>
    %58 = vector.extract_strided_slice %9 {offsets = [0, 16], sizes = [16, 8], strides = [1, 1]} : vector<16x32xf32> to vector<16x8xf32>
    %59 = vector.extract_strided_slice %10 {offsets = [0, 16], sizes = [16, 8], strides = [1, 1]} : vector<16x32xf32> to vector<16x8xf32>
    %60 = vector.extract_strided_slice %11 {offsets = [0, 16], sizes = [16, 8], strides = [1, 1]} : vector<16x32xf32> to vector<16x8xf32>
    %61 = tpu.transpose %59, [1, 0] : vector<16x8xf32> -> vector<8x16xf32>
    %cst_22 = arith.constant dense<0.000000e+00> : vector<16x16xf32>
    %62 = tpu.matmul %58, %61, %cst_22 {dimension_numbers = #tpu.dot_dimension_numbers<[1], [0], [0], [1], [0, 0, 1, 1], [], []>} : vector<16x8xf32>, vector<8x16xf32>, vector<16x16xf32> -> vector<16x16xf32>
    %cst_23 = arith.constant 0.176776692 : f32
    %63 = vector.broadcast %cst_23 : f32 to vector<16x16xf32>
    %64 = arith.mulf %62, %63 : vector<16x16xf32>
    %c0_i32_24 = arith.constant 0 : i32
    %65 = vector.broadcast %c0_i32_24 : i32 to vector<1x16xi32>
    %66 = arith.cmpi eq, %3, %65 : vector<1x16xi32>
    %cst_25 = arith.constant -1.000000e+09 : f32
    %67 = vector.shape_cast %66 : vector<1x16xi1> to vector<1x16xi1>
    %68 = vector.broadcast %67 : vector<1x16xi1> to vector<16x16xi1>
    %69 = vector.broadcast %cst_25 : f32 to vector<16x16xf32>
    %70 = arith.select %68, %69, %64 : vector<16x16xi1>, vector<16x16xf32>
    %cst_26 = arith.constant dense<0xFF800000> : vector<16xf32>
    %71 = vector.multi_reduction <maximumf>, %70, %cst_26 [1] : vector<16x16xf32> to vector<16xf32>
    %72 = vector.shape_cast %71 : vector<16xf32> to vector<16x1xf32>
    %73 = vector.broadcast %72 : vector<16x1xf32> to vector<16x16xf32>
    %74 = arith.subf %70, %73 : vector<16x16xf32>
    %75 = math.exp %74 : vector<16x16xf32>
    %cst_27 = arith.constant dense<0.000000e+00> : vector<16xf32>
    %76 = vector.multi_reduction <add>, %75, %cst_27 [1] : vector<16x16xf32> to vector<16xf32>
    %77 = vector.shape_cast %76 : vector<16xf32> to vector<16x1xf32>
    %78 = vector.broadcast %77 : vector<16x1xf32> to vector<16x16xf32>
    %79 = arith.divf %75, %78 : vector<16x16xf32>
    %cst_28 = arith.constant dense<0.000000e+00> : vector<16x8xf32>
    %80 = tpu.matmul %79, %60, %cst_28 {dimension_numbers = #tpu.dot_dimension_numbers<[1], [0], [0], [1], [0, 0, 1, 1], [], []>} : vector<16x16xf32>, vector<16x8xf32>, vector<16x8xf32> -> vector<16x8xf32>
    %81 = vector.extract_strided_slice %9 {offsets = [0, 24], sizes = [16, 8], strides = [1, 1]} : vector<16x32xf32> to vector<16x8xf32>
    %82 = vector.extract_strided_slice %10 {offsets = [0, 24], sizes = [16, 8], strides = [1, 1]} : vector<16x32xf32> to vector<16x8xf32>
    %83 = vector.extract_strided_slice %11 {offsets = [0, 24], sizes = [16, 8], strides = [1, 1]} : vector<16x32xf32> to vector<16x8xf32>
    %84 = tpu.transpose %82, [1, 0] : vector<16x8xf32> -> vector<8x16xf32>
    %cst_29 = arith.constant dense<0.000000e+00> : vector<16x16xf32>
    %85 = tpu.matmul %81, %84, %cst_29 {dimension_numbers = #tpu.dot_dimension_numbers<[1], [0], [0], [1], [0, 0, 1, 1], [], []>} : vector<16x8xf32>, vector<8x16xf32>, vector<16x16xf32> -> vector<16x16xf32>
    %cst_30 = arith.constant 0.176776692 : f32
    %86 = vector.broadcast %cst_30 : f32 to vector<16x16xf32>
    %87 = arith.mulf %85, %86 : vector<16x16xf32>
    %c0_i32_31 = arith.constant 0 : i32
    %88 = vector.broadcast %c0_i32_31 : i32 to vector<1x16xi32>
    %89 = arith.cmpi eq, %3, %88 : vector<1x16xi32>
    %cst_32 = arith.constant -1.000000e+09 : f32
    %90 = vector.shape_cast %89 : vector<1x16xi1> to vector<1x16xi1>
    %91 = vector.broadcast %90 : vector<1x16xi1> to vector<16x16xi1>
    %92 = vector.broadcast %cst_32 : f32 to vector<16x16xf32>
    %93 = arith.select %91, %92, %87 : vector<16x16xi1>, vector<16x16xf32>
    %cst_33 = arith.constant dense<0xFF800000> : vector<16xf32>
    %94 = vector.multi_reduction <maximumf>, %93, %cst_33 [1] : vector<16x16xf32> to vector<16xf32>
    %95 = vector.shape_cast %94 : vector<16xf32> to vector<16x1xf32>
    %96 = vector.broadcast %95 : vector<16x1xf32> to vector<16x16xf32>
    %97 = arith.subf %93, %96 : vector<16x16xf32>
    %98 = math.exp %97 : vector<16x16xf32>
    %cst_34 = arith.constant dense<0.000000e+00> : vector<16xf32>
    %99 = vector.multi_reduction <add>, %98, %cst_34 [1] : vector<16x16xf32> to vector<16xf32>
    %100 = vector.shape_cast %99 : vector<16xf32> to vector<16x1xf32>
    %101 = vector.broadcast %100 : vector<16x1xf32> to vector<16x16xf32>
    %102 = arith.divf %98, %101 : vector<16x16xf32>
    %cst_35 = arith.constant dense<0.000000e+00> : vector<16x8xf32>
    %103 = tpu.matmul %102, %83, %cst_35 {dimension_numbers = #tpu.dot_dimension_numbers<[1], [0], [0], [1], [0, 0, 1, 1], [], []>} : vector<16x16xf32>, vector<16x8xf32>, vector<16x8xf32> -> vector<16x8xf32>
    %104 = tpu.concatenate %34, %57, %80, %103 in 1 : vector<16x8xf32>, vector<16x8xf32>, vector<16x8xf32>, vector<16x8xf32> -> vector<16x32xf32>
    %c0_36 = arith.constant 0 : index
    %c0_37 = arith.constant 0 : index
    %105 = vector.load %arg5[%c0_36, %c0_37] : memref<32x32xf32, #tpu.memory_space<vmem>>, vector<32x32xf32>
    %cst_38 = arith.constant dense<0.000000e+00> : vector<16x32xf32>
    %106 = tpu.matmul %104, %105, %cst_38 {dimension_numbers = #tpu.dot_dimension_numbers<[1], [0], [0], [1], [0, 0, 1, 1], [], []>} : vector<16x32xf32>, vector<32x32xf32>, vector<16x32xf32> -> vector<16x32xf32>
    %c0_39 = arith.constant 0 : index
    %c0_40 = arith.constant 0 : index
    %107 = vector.load %arg6[%c0_39, %c0_40] : memref<1x32xf32, #tpu.memory_space<vmem>>, vector<1x32xf32>
    %108 = vector.broadcast %107 : vector<1x32xf32> to vector<16x32xf32>
    %109 = arith.addf %106, %108 : vector<16x32xf32>
    %c0_41 = arith.constant 0 : index
    %c0_42 = arith.constant 0 : index
    %c0_43 = arith.constant 0 : index
    %110 = vector.load %arg7[%c0_41, %c0_42, %c0_43] : memref<1x16x32xf32, #tpu.memory_space<vmem>>, vector<1x16x32xf32>
    %111 = vector.shape_cast %110 : vector<1x16x32xf32> to vector<16x32xf32>
    %112 = vector.shape_cast %109 : vector<16x32xf32> to vector<1x16x32xf32>
    tpu.vector_store %arg7[%c0_41, %c0_42, %c0_43], %112 {strides = array<i32>} : memref<1x16x32xf32, #tpu.memory_space<vmem>>, vector<1x16x32xf32>,
    return
  }
  func.func @transform_0(%arg0: i32) -> (i32, i32, i32) {
    %c0_i32 = arith.constant 0 : i32
    %c0_i32_0 = arith.constant 0 : i32
    %c0_i32_1 = arith.constant 0 : i32
    return %arg0, %c0_i32, %c0_i32_0 : i32, i32, i32
  }
  func.func @transform_1(%arg0: i32) -> (i32, i32, i32) {
    %c0_i32 = arith.constant 0 : i32
    %c0_i32_0 = arith.constant 0 : i32
    %c0_i32_1 = arith.constant 0 : i32
    return %arg0, %c0_i32, %c0_i32_0 : i32, i32, i32
  }
  func.func @transform_2(%arg0: i32) -> (i32, i32) {
    %c0_i32 = arith.constant 0 : i32
    %c0_i32_0 = arith.constant 0 : i32
    %c0_i32_1 = arith.constant 0 : i32
    return %c0_i32, %c0_i32_0 : i32, i32
  }
  func.func @transform_3(%arg0: i32) -> (i32, i32) {
    %c0_i32 = arith.constant 0 : i32
    %c0_i32_0 = arith.constant 0 : i32
    %c0_i32_1 = arith.constant 0 : i32
    return %c0_i32, %c0_i32_0 : i32, i32
  }
  func.func @transform_4(%arg0: i32) -> (i32, i32) {
    %c0_i32 = arith.constant 0 : i32
    %c0_i32_0 = arith.constant 0 : i32
    %c0_i32_1 = arith.constant 0 : i32
    return %c0_i32, %c0_i32_0 : i32, i32
  }
  func.func @transform_5(%arg0: i32) -> (i32, i32) {
    %c0_i32 = arith.constant 0 : i32
    %c0_i32_0 = arith.constant 0 : i32
    %c0_i32_1 = arith.constant 0 : i32
    return %c0_i32, %c0_i32_0 : i32, i32
  }
  func.func @transform_6(%arg0: i32) -> (i32, i32, i32) {
    %c0_i32 = arith.constant 0 : i32
    %c0_i32_0 = arith.constant 0 : i32
    %c0_i32_1 = arith.constant 0 : i32
    return %arg0, %c0_i32, %c0_i32_0 : i32, i32, i32
  }
}

</mosaic_0001>

<bundles_post_ra>
// kernel: tpu_custom_call.1
= control target key start
LH: loop header
LB: loop body
LE: loop exit
PB: predicated region body
PF: predicated region fallthrough
CT: control target
= control target key end

     0   :  { %s2412_s0 = inlined_call_operand.hbm [shape: f32[2,16,32], index: 0, kind: input, shape index: {}]   ;;  %s2413_s1 = inlined_call_operand.hbm [shape: s32[2,1,16], index: 1, kind: input, shape index: {}]   ;;  %s2414_s2 = inlined_call_operand.hbm [shape: f32[32,96], index: 2, kind: input, shape index: {}]   ;;  %s2415_s3 = inlined_call_operand.vmem [shape: f32[1,96], index: 3, kind: input, shape index: {}]   ;;  %s2416_s4 = inlined_call_operand.hbm [shape: f32[32,32], index: 4, kind: input, shape index: {}]   ;;  %s2417_s5 = inlined_call_operand.vmem [shape: f32[1,32], index: 5, kind: input, shape index: {}]   ;;  %s2418_s6 = inlined_call_operand.hbm [shape: f32[2,16,32], index: 6, kind: output, shape index: {}]  }
   0x1   :  { %2425 = sst [smem:[#allocation18_spill]] %s2412_s0 }
   0x2   :  { %2426 = sst [smem:[#allocation19_spill]] %s2414_s2 }
   0x3   :  { %2427 = sst [smem:[#allocation20_spill]] %s2416_s4 }
   0x4   :  { %11 = vsyncpa [#allocation3], 0 }
   0x5   :  { %13 = vsyncpa [#allocation3 + $0x1], 0 }
   0x6   :  { %14 = vsyncpa [#allocation6], 0 }
   0x7   :  { %16 = vsyncpa [#allocation6 + $0x1], 0 }
   0x8   :  { %17 = vsyncpa [#allocation9], 0 }
   0x9   :  { %18 = vsyncpa [#allocation4], 0 }
   0xa   :  { %20 = vsyncpa [#allocation4 + $0x1], 0  ;;  %s2042_s21 = smov 0   ;;  %s2044_s22 = smov 0  }
   0xb   :  { %s2046_s23 = smov 0   ;;  %s2048_s24 = smov 0  }
   0xc LB: > { %2428 = sst [smem:[#allocation16_spill]] %s1978_s23  ;;  %s2063_s25 = sadd.s32 4294967295, %s1982_s24   ;;  %s1982_s24 = sphi %s2048_s24, %s2455_s24   ;;  %s1978_s23 = sphi %s2046_s23, %s2452_s23   ;;  %s1974_s22 = sphi %s2044_s22, %s2454_s22   ;;  %s1970_s21 = sphi %s2042_s21, %s2453_s21  }
   0xd   : > { %s1503_s26 = sadd.s32 4294967294, %s1982_s24   ;;  %p46_p0 = scmp.ne.s32.totalorder %s1974_s22, %s1970_s21 }
   0xe   : > { %p2420_p1 = scmp.eq.s32.totalorder %s2063_s25, 0  ;;  %p180_p2 = scmp.eq.s32.totalorder %s2063_s25, 1 }
   0xf   : > { %p186_p3 = scmp.eq.s32.totalorder %s1503_s26, 1  ;;  %p1504_p5 = scmp.ge.s32.totalorder %s1982_s24, 1 }
  0x10   : > { %p2072_p4 = por %p2420_p1, %p46_p0  ;;  %p193_p7 = scmp.lt.s32.totalorder %s1982_s24, 3 }
  0x11   : > { %p2077_p6 = por %p186_p3, %p46_p0  ;;  %s1984_s30 = smov [#allocation7]  }
  0x12   : > { %s2429_s27 = scalar_select %p2072_p4, 1, 0 }
  0x13   : > { %s2430_s28 = scalar_select %p2077_p6, 1, 0 }
  0x14   : > { %p2082_p8 = pnand %p1504_p5, %p193_p7  ;;  %s205_s7 = sshll.u32 %s1984_s30, 4  ;;  %s206_s7 = int_to_ptr.vmem [resolvable:$true] %s205_s7 }
  0x15   : > { %s1985_s9 = smov [#allocation8]   ;;  %s1809_s11 = scalar_lea.vmem %s206_s7, 512 }
  0x16   : > { %s2431_s29 = scalar_select %p2082_p8, 1, 0 }
  0x17   : > { %p1690_p9 = pneg %p2082_p8  ;;  %s221_s10 = sshll.u32 %s1985_s9, 4  ;;  %s222_s10 = int_to_ptr.vmem [resolvable:$true] %s221_s10 }
  0x18   : > { %p1810_p13 = scmp.ne.s32.totalorder %s206_s7, %s1809_s11  ;;  %p1817_p5 = scmp.lt.s32.totalorder %s206_s7, %s206_s7 }
  0x19   : > { %p2091_p11 = pnand %p1690_p9, %p2420_p1  ;;  %p1818_p7 = scmp.lt.s32.totalorder %s1809_s11, %s1809_s11 }
  0x1b   : > { %p1800_p12 = pneg %p2091_p11  ;;  %p1819_p10 = por %p1818_p7, %p1817_p5 }
  0x1d   : > { %p1812_p0 = pnand %p1810_p13, %p1800_p12 }
  0x1f   : > { %p1813_p3 = pneg %p1812_p0 }
  0x21   : > { %p1820_p9 = pnand %p1819_p10, %p1813_p3 }
  0x23   : > { %1823 = shalt.err (!%p1820_p9)
}
  0x24   : > { %s2419_s12 = smov 128   ;;  %s1987_s13 = smov 8  }
  0x25   : > { %s2433_s2 = sld [smem:[#allocation19_spill]]  ;;  %s1835_s16 = scalar_lea.vmem %s222_s10, 512 }
  0x26   : > { %p1836_p13 = scmp.ne.s32.totalorder %s222_s10, %s1835_s16  ;;  %p1843_p10 = scmp.lt.s32.totalorder %s222_s10, %s222_s10 }
  0x27   : > { %p1844_p3 = scmp.lt.s32.totalorder %s1835_s16, %s1835_s16 }
  0x28   : > { %p1838_p0 = pnand %p1836_p13, %p1800_p12 }
  0x29   : > { %p1845_p7 = por %p1844_p3, %p1843_p10 }
  0x2a   : > { %p1839_p5 = pneg %p1838_p0 }
  0x2b   : > { %1693 = dma.hbm_to_vmem [thread:$0]  (!%p2091_p11), %s2433_s2, 512, %s206_s7, [#allocation6], %s2419_s12, %s2419_s12, %s1987_s13  }
  0x2c   : > { %p1846_p9 = pnand %p1845_p7, %p1839_p5 }
  0x2e   : > { %1849 = shalt.err (!%p1846_p9)
}
  0x2f   : > { %s2434_s4 = sld [smem:[#allocation20_spill]]  ;;  %s2120_s19 = sadd.s32 1, %s1982_s24  }
  0x30   : > { %s33_s20 = sadd.s32 1, %s1978_s23  ;;  %s30_s26 = ssub.s32 %s1982_s24, %s2120_s19 }
  0x31   : > { %p40_p12 = scmp.ne.s32.totalorder %s1978_s23, %s1974_s22  ;;  %p31_p13 = scmp.eq.s32.totalorder %s30_s26, 0 }
  0x32   : > { %p41_p0 = scmp.eq.s32.totalorder %s1982_s24, 0  ;;  %p1710_p10 = scmp.lt.s32.totalorder %s1982_s24, 2 }
  0x33   : > { %p2130_p5 = por %p180_p2, %p40_p12  ;;  %s2139_s8 = sand.u32 1, %s1978_s23  }
  0x34   : > { %s2136_s7 = scalar_select %p31_p13, %s1978_s23, %s33_s20  }
  0x35   : > { %1696 = dma.hbm_to_vmem [thread:$0]  (!%p2091_p11), %s2434_s4, 512, %s222_s10, [#allocation9], %s2419_s12, %s2419_s12, %s1987_s13  }
  0x36   : > { %s2435_s30 = scalar_select %p2130_p5, 1, 0 }
  0x37   : > { %2436 = sst [smem:[#allocation17_spill]] %s2136_s7  ;;  %p42_p3 = por %p41_p0, %p40_p12 }
  0x38   : > { %s1508_s9 = sshll.u32 %s2139_s8, 4  ;;  %s1552_s10 = sshll.u32 %s1982_s24, 8 }
  0x39   : > { %s2437_s0 = sld [smem:[#allocation18_spill]]  ;;  %s242_s16 = scalar_lea.vmem [#allocation2], %s1508_s9 }
  0x3a   : > { %s249_s17 = sshll.u32 %s242_s16, 4  ;;  %p2150_p2 = pnand %p1710_p10, %p42_p3  ;;  %s2148_s17 = int_to_ptr.vmem [resolvable:$true] %s249_s17 }
  0x3c   : > { %p1852_p7 = pneg %p2150_p2 }
  0x3f   : > { %s2146_s15 = scalar_lea.hbm %s2437_s0, %s1552_s10  ;;  %s1855_s11 = scalar_lea.hbm %s2437_s0, 512 }
  0x40   : > { %s1850_s12 = scalar_lea.hbm %s2146_s15, 256  ;;  %p1856_p13 = scmp.lt.s32.totalorder %s2146_s15, %s2437_s0 }
  0x41   : > { %p1851_p11 = scmp.ne.s32.totalorder %s2146_s15, %s1850_s12  ;;  %p1857_p0 = scmp.lt.s32.totalorder %s1855_s11, %s1850_s12 }
  0x43   : > { %p1853_p9 = pnand %p1852_p7, %p1851_p11  ;;  %p1858_p10 = por %p1857_p0, %p1856_p13 }
  0x45   : > { %p1854_p12 = pneg %p1853_p9 }
  0x47   : > { %p1859_p3 = pnand %p1858_p10, %p1854_p12 }
  0x49   : > { %1862 = shalt.err (!%p1859_p3)
}
  0x4a   : > { %s1863_s20 = scalar_lea.vmem %s2148_s17, 256  ;;  %s1988_s9 = smov [#allocation2]  }
  0x4b   : > { %p1864_p1 = scmp.ne.s32.totalorder %s2148_s17, %s1863_s20  ;;  %s1868_s10 = sshll.u32 %s1988_s9, 4  ;;  %s1869_s10 = int_to_ptr.vmem [resolvable:$false] %s1868_s10 }
  0x4c   : > { %s1870_s26 = scalar_lea.vmem %s1869_s10, 512  ;;  %p1871_p6 = scmp.lt.s32.totalorder %s2148_s17, %s1869_s10 }
  0x4d   : > { %p1866_p11 = pnand %p1864_p1, %p1852_p7  ;;  %p1872_p5 = scmp.lt.s32.totalorder %s1870_s26, %s1863_s20 }
  0x4f   : > { %p1867_p9 = pneg %p1866_p11  ;;  %p1873_p4 = por %p1872_p5, %p1871_p6 }
  0x51   : > { %p1874_p13 = pnand %p1873_p4, %p1867_p9 }
  0x53   : > { %1877 = shalt.err (!%p1874_p13)
}
  0x54   : > { %s2439_s12 = smov 128   ;;  %s2440_s11 = scalar_lea.sflag [#allocation3], %s2139_s8 }
  0x55   : > { %1700 = dma.hbm_to_vmem [thread:$0]  (!%p2150_p2), %s2146_s15, 256, %s2148_s17, %s2440_s11, %s2439_s12, %s2439_s12, %s1987_s13  }
  0x56   : > { %s1511_s14 = sshll.u32 %s1982_s24, 4  ;;  %s262_s16 = scalar_lea.vmem [#allocation5], %s2139_s8 }
  0x57   : > { %s269_s20 = sshll.u32 %s262_s16, 4  ;;  %s267_s10 = scalar_lea.hbm %s2413_s1, %s1511_s14  ;;  %s270_s20 = int_to_ptr.vmem [resolvable:$true] %s269_s20 }
  0x58   : > { %s2441_s0 = sand.u32 1, %s1982_s24   ;;  %s1878_s4 = scalar_lea.hbm %s267_s10, 16 }
  0x59   : > { %s260_s2 = scalar_lea.sflag [#allocation6], %s2441_s0  ;;  %p1879_p1 = scmp.ne.s32.totalorder %s267_s10, %s1878_s4 }
  0x5a   : > { %s1883_s13 = scalar_lea.hbm %s2413_s1, 32  ;;  %p1884_p5 = scmp.lt.s32.totalorder %s267_s10, %s2413_s1 }
  0x5b   : > { %p1881_p4 = pnand %p1879_p1, %p1852_p7  ;;  %p1885_p12 = scmp.lt.s32.totalorder %s1883_s13, %s1878_s4 }
  0x5d   : > { %p1882_p6 = pneg %p1881_p4  ;;  %p1886_p0 = por %p1885_p12, %p1884_p5 }
  0x5f   : > { %p1887_p10 = pnand %p1886_p0, %p1882_p6 }
  0x61   : > { %1890 = shalt.err (!%p1887_p10)
}
  0x62   : > { %s1891_s17 = scalar_lea.vmem %s270_s20, 16  ;;  %s1989_s0 = smov [#allocation5]  }
  0x63   : > { %p1892_p3 = scmp.ne.s32.totalorder %s270_s20, %s1891_s17  ;;  %s1896_s12 = sshll.u32 %s1989_s0, 4  ;;  %s1897_s12 = int_to_ptr.vmem [resolvable:$false] %s1896_s12 }
  0x64   : > { %s1898_s23 = scalar_lea.vmem %s1897_s12, 32  ;;  %p1899_p13 = scmp.lt.s32.totalorder %s270_s20, %s1897_s12 }
  0x65   : > { %p1894_p11 = pnand %p1892_p3, %p1852_p7  ;;  %p1900_p1 = scmp.lt.s32.totalorder %s1898_s23, %s1891_s17 }
  0x67   : > { %p1895_p9 = pneg %p1894_p11  ;;  %p1901_p4 = por %p1900_p1, %p1899_p13 }
  0x69   : > { %p1902_p8 = pnand %p1901_p4, %p1895_p9 }
  0x6b   : > { %1905 = shalt.err (!%p1902_p8)
}
  0x6c   : > { %1703 = dma.hbm_to_vmem [thread:$0]  (!%p2150_p2), %s267_s10, 16, %s270_s20, %s260_s2  }
  0x6d   : > { %p2442_p6 = scmp.ne.s32.totalorder %s2431_s29, 0 }
  0x6e   : > { %s2209_s4 = sand.u32 (!%p2442_p6), 1, %s1974_s22   ;;  %p2443_p7 = scmp.ne.s32.totalorder (!%p2442_p6), %s2429_s27, 0 }
  0x6f   : > { %278 = sbr.rel (%p2442_p6) target bundleno = 3054 (0xbee), region = 44  ;;  %s1513_s7 = sshll.u32 (!%p2442_p6), %s2209_s4, 4 }
  0x70   : > { %s281_s11 = scalar_lea.sflag (!%p2442_p6), [#allocation3], %s2209_s4  ;;  %s284_s14 = scalar_lea.vmem (!%p2442_p6), [#allocation2], %s1513_s7 }
  0x74   : > { %1949 = dma.done.wait (%p2443_p7), %s281_s11, 256  }
  0x75   : > { %1951 = vsyncadd (%p2443_p7), %s281_s11, 4294967040  ;;  %s289_s2 = sand.u32 1, %s2063_s25   ;;  %s292_s18 = scalar_lea.vmem [#allocation5], %s2209_s4 }
  0x76   : > { %s290_s29 = scalar_lea.sflag [#allocation6], %s289_s2 }
  0x77   : > { %1953 = dma.done.wait (%p2443_p7), %s290_s29, 16  }
  0x78   : > { %1955 = vsyncadd (%p2443_p7), %s290_s29, 4294967280  ;;  %p2444_p8 = scmp.eq.s32.totalorder %s2063_s25, 0 }
  0x7a   : > { %1957 = dma.done.wait (%p2444_p8), [#allocation6], 512   ;;  %p2445_p2 = pmov %p2444_p8 }
  0x7c   : > { %1959 = vsyncadd (%p2445_p2), [#allocation6], 4294966784  ;;  %p2446_p5 = pmov %p2445_p2 }
  0x7d   : > { %p2447_p12 = pmov %p2445_p2 }
  0x7e   : > { %1961 = dma.done.wait (%p2446_p5), [#allocation9], 512  }
  0x7f   : > { %1963 = vsyncadd (%p2447_p12), [#allocation9], 4294966784  ;;  %vm347_vm0 = vcmask 261120   ;;  %v339_v0 = vld [vmem:[#allocation7 + $0x18] sm:$0xff]  ;;  %v338_v1 = vld [vmem:[#allocation7 + $0x10] sm:$0xff]  ;;  %vm435_vm1 = vcmask 64512   ;;  %v523_v13 = vlaneseq }
  0x80   : > { %1598 = vmatprep.subr.mxu0 %v339_v0  ;;  %v333_v2 = vld [vmem:[%s284_s14] sm:$0xff]  ;;  %v334_v5 = vld [vmem:[%s284_s14 + $0x8] sm:$0xff]  ;;  %s1990_s20 = smov 96   ;;  %v1991_v17 = vmov 0   ;;  %vm530_vm4 = vcmask 130048   ;;  %s1992_s26 = smov 64  }
  0x81   : > { %1599 = vmatpush3.msra.mxu0 %v339_v0  ;;  %v337_v3 = vld [vmem:[#allocation7 + $0x8] sm:$0xff]  ;;  %1606 = vmatprep.mubr.msk.f32.mxu0 %vm347_vm0, %v333_v2  ;;  %v336_v4 = vld [vmem:[#allocation7] sm:$0xff]  ;;  %v1517_v6 = vld [vmem:[%s2415_s3] ss:$0 sm:$0xff]  ;;  %v524_v15 = vshrl.u32 %v523_v13, 7  ;;  %s1993_s9 = smov 120  }
  0x82   : > { %1600 = vmatprep.subr.mxu0 %v338_v1  ;;  %v335_v14 = vld [vmem:[%s292_s18] sm:$0x1]  ;;  %s1994_s10 = smov 88   ;;  %s1995_s13 = smov 56   ;;  %vm1280_vm5 = vcmask 195584  }
  0x83   : > { %1601 = vmatpush3.msra.mxu0 %v338_v1  ;;  %vm521_vm2 = vcmp.eq.s32.totalorder %v335_v14, 0  ;;  %v525_v16 = vsub.s32 0, %v524_v15  ;;  %s1996_s15 = smov 80   ;;  %s1997_s8 = smov 112  }
  0x84   : > { %1602 = vmatprep.subr.mxu0 %v337_v3  ;;  %v522_v18 = vsel %vm521_vm2, 1, %v1991_v17  ;;  %s1998_s17 = smov 48   ;;  %s1999_s0 = smov 72  }
  0x85   : > { %1603 = vmatpush3.msra.mxu0 %v337_v3  ;;  %v2254_v20 = vrot.slane %v522_v18, %v525_v16  ;;  %s2000_s12 = smov 104   ;;  %s2001_s23 = smov 40  }
  0x86   : > { %1604 = vmatprep.subr.mxu0 %v336_v4  ;;  %s2002_s11 = smov 8   ;;  %s2003_s14 = smov 16  }
  0x87   : > { %1605 = vmatpush3.msra.mxu0 %v336_v4  ;;  %vm527_vm3 = vcmp.eq.s32.totalorder %v2254_v20, 1  ;;  %s2004_s2 = smov 24   ;;  %s332_s27 = scalar_lea.vmem [#allocation10], %s1513_s7 }
  0x88   : > { %1607 = vmatmul.mubr.msk.f32.vlgmr.msra.gmra.mxu0 %vm347_vm0, %v334_v5  ;;  %s1391_s16 = sshll.u32 %s332_s27, 4  ;;  %s1378_s7 = scalar_lea.sflag [#allocation4], %s2209_s4  ;;  %s2361_s16 = int_to_ptr.vmem [resolvable:$true] %s1391_s16 }
  0x89   : > { %p2448_p10 = scmp.ne.s32.totalorder %s2435_s30, 0 }
 0x148   : > { %v1608_v7 = vpop.f32.mrf.mxu0 }
 0x149   : > { %v2238_v8 = vadd.f32 %v1608_v7, %v1517_v6 }
 0x14a   : > { %v420_v9 = vpop.f32.mrf.mxu0 }
 0x14b   : > { %v2240_v10 = vadd.f32 %v1517_v6, %v420_v9  ;;  %433 = vrot.lane.b32.xlu0 %v2238_v8, %s1990_s20 }
 0x14d   : > { %1613 = vmatprep.mubr.msk.f32.mxu1 %vm435_vm1, %v2240_v10 }
 0x14f   : > { %431 = vrot.lane.b32.xlu0 %v2240_v10, %s1990_s20  ;;  %s1553_s20 = sshll.u32 %s2063_s25, 8  ;;  %s2005_s25 = smov [#allocation10]  }
 0x1bd   : > { %v434_v11 = vpop.permute.xlu0 %433 }
 0x1be   : > { %1609 = vmatprep.subr.msk.mxu1 %vm435_vm1, %v434_v11 }
 0x1bf   : > { %1610 = vmatpush3.xpose.msk.msra.mxu1 %vm435_vm1, %v434_v11 }
 0x1c1   : > { %v432_v12 = vpop.permute.xlu0 %431 }
 0x1c2   : > { %1611 = vmatprep.subr.msk.mxu1 %vm435_vm1, %v432_v12 }
 0x1c3   : > { %1612 = vmatpush3.xpose.msk.msra.mxu1 %vm435_vm1, %v432_v12 }
 0x1c6   : > { %1614 = vmatmul.mubr.msk.f32.vlgmr.msra.gmra.mxu1 %vm435_vm1, %v2238_v8 }
 0x286   : > { %v1615_v19 = vpop.f32.mrf.mxu1 }
 0x287   : > { %v520_v22 = vmul.f32 0.17677669, %v1615_v19 }
 0x288   : > { %v510_v21 = vpop.f32.mrf.mxu1 }
 0x289   : > { %v519_v23 = vmul.f32 0.17677669, %v510_v21  ;;  %v529_v26 = vsel %vm527_vm3, -1e+09, %v520_v22 }
 0x28a   : > { %v534_v27 = vsel %vm530_vm4, %v529_v26, -inf }
 0x28b   : > { %v528_v24 = vsel %vm527_vm3, -1e+09, %v519_v23 }
 0x28c   : > { %v531_v25 = vsel %vm530_vm4, %v528_v24, -inf }
 0x28d   : > { %532 = vmax.xlane.f32.xlu1 %v531_v25 }
 0x291   : > { %535 = vmax.xlane.f32.xlu1 %v534_v27 }
 0x316   : > { %v533_v28 = vpop.xlane.xlu1 %532 }
 0x317   : > { %v537_v29 = vsub.f32 %v528_v24, %v533_v28 }
 0x319   : > { %v539_v30 = vmul.f32 1.442695, %v537_v29 }
 0x31a   : > { %v536_v31 = vpop.xlane.xlu1 %535 }
 0x31b   : > { %1766 = vpow2.f32 %v539_v30  ;;  %v538_v32 = vsub.f32 %v529_v26, %v536_v31 }
 0x31d   : > { %v541_v33 = vmul.f32 1.442695, %v538_v32 }
 0x31f   : > { %1768 = vpow2.f32 %v541_v33 }
 0x328   : > { %v1767_v34 = vpop.eup %1766 }
 0x329   : > { %v543_v35 = vsel %vm530_vm4, %v1767_v34, 0.0 }
 0x32a   : > { %544 = vadd.xlane.f32.xlu0 %v543_v35 }
 0x32c   : > { %v1769_v36 = vpop.eup %1768 }
 0x32d   : > { %v546_v37 = vsel %vm530_vm4, %v1769_v36, 0.0 }
 0x32e   : > { %547 = vadd.xlane.f32.xlu1 %v546_v37 }
 0x33f   : > { %555 = vrot.lane.b32.xlu1 %v2238_v8, %s1992_s26 }
 0x340   : > { %640 = vrot.lane.b32.xlu0 %v2240_v10, %s1993_s9 }
 0x343   : > { %553 = vrot.lane.b32.xlu1 %v2240_v10, %s1992_s26 }
 0x347   : > { %646 = vrot.lane.b32.xlu1 %v2238_v8, %s1994_s10 }
 0x34b   : > { %644 = vrot.lane.b32.xlu1 %v2240_v10, %s1994_s10  ;;  %s2367_s10 = scalar_lea.hbm %s2418_s6, %s1553_s20 }
 0x34f   : > { %642 = vrot.lane.b32.xlu1 %v2238_v8, %s1993_s9 }
 0x3b3   : > { %v545_v38 = vpop.xlane.xlu0 %544 }
 0x3b4   : > { %1770 = vrcp.f32 %v545_v38 }
 0x3b7   : > { %v548_v39 = vpop.xlane.xlu1 %547  ;;  %v641_v48 = vpop.permute.xlu0 %640 }
 0x3b8   : > { %1772 = vrcp.f32 %v548_v39 }
 0x3bb   : > { %v556_v40 = vpop.permute.xlu1 %555 }
 0x3bc   : > { %1616 = vmatprep.subr.mxu1 %v556_v40 }
 0x3bd   : > { %1617 = vmatpush3.msra.mxu1 %v556_v40 }
 0x3bf   : > { %v554_v41 = vpop.permute.xlu1 %553 }
 0x3c0   : > { %1618 = vmatprep.subr.mxu1 %v554_v41 }
 0x3c1   : > { %v1771_v42 = vpop.eup %1770  ;;  %1619 = vmatpush3.msra.mxu1 %v554_v41 }
 0x3c2   : > { %v550_v43 = vmul.f32 %v1771_v42, %v1767_v34 }
 0x3c3   : > { %v647_v44 = vpop.permute.xlu1 %646 }
 0x3c4   : > { %1620 = vmatprep.mubr.msk.f32.mxu1 %vm530_vm4, %v550_v43  ;;  %1623 = vmatprep.subr.msk.mxu1 %vm435_vm1, %v647_v44 }
 0x3c5   : > { %v1773_v45 = vpop.eup %1772 }
 0x3c6   : > { %v552_v46 = vmul.f32 %v1773_v45, %v1769_v36 }
 0x3c7   : > { %v645_v47 = vpop.permute.xlu1 %644 }
 0x3c8   : > { %1621 = vmatmul.mubr.msk.f32.vlgmr.msra.gmra.mxu1 %vm530_vm4, %v552_v46 }
 0x3c9   : > { %1624 = vmatpush3.xpose.msk.msra.mxu1 %vm435_vm1, %v647_v44  ;;  %1627 = vmatprep.mubr.msk.f32.mxu1 %vm435_vm1, %v641_v48 }
 0x3ca   : > { %1625 = vmatprep.subr.msk.mxu1 %vm435_vm1, %v645_v47 }
 0x3cb   : > { %v643_v49 = vpop.permute.xlu1 %642 }
 0x3cd   : > { %1626 = vmatpush3.xpose.msk.msra.mxu1 %vm435_vm1, %v645_v47 }
 0x3d0   : > { %1628 = vmatmul.mubr.msk.f32.vlgmr.msra.gmra.mxu1 %vm435_vm1, %v643_v49 }
 0x488   : > { %v2279_v50 = vpop.f32.mrf.mxu1 }
 0x48a   : > { %v2281_v51 = vpop.f32.mrf.mxu1 }
 0x490   : > { %v1629_v52 = vpop.f32.mrf.mxu1 }
 0x491   : > { %v732_v53 = vmul.f32 0.17677669, %v1629_v52 }
 0x492   : > { %v722_v54 = vpop.f32.mrf.mxu1 }
 0x493   : > { %v731_v55 = vmul.f32 0.17677669, %v722_v54  ;;  %v734_v56 = vsel %vm527_vm3, -1e+09, %v732_v53 }
 0x494   : > { %v738_v57 = vsel %vm530_vm4, %v734_v56, -inf }
 0x495   : > { %739 = vmax.xlane.f32.xlu0 %v738_v57  ;;  %v733_v58 = vsel %vm527_vm3, -1e+09, %v731_v55 }
 0x496   : > { %v735_v59 = vsel %vm530_vm4, %v733_v58, -inf }
 0x497   : > { %736 = vmax.xlane.f32.xlu1 %v735_v59 }
 0x4a8   : > { %759 = vrot.lane.b32.xlu1 %v2238_v8, %s1995_s13 }
 0x4ab   : > { %757 = vrot.lane.b32.xlu0 %v2240_v10, %s1995_s13  ;;  %s1906_s13 = scalar_lea.vmem %s2361_s16, 256 }
 0x4ac   : > { %850 = vrot.lane.b32.xlu1 %v2238_v8, %s1996_s15  ;;  %p1907_p0 = scmp.ne.s32.totalorder %s2361_s16, %s1906_s13 }
 0x4ae   : > { %p1908_p3 = pnand %p1907_p0, %p2448_p10 }
 0x4af   : > { %844 = vrot.lane.b32.xlu0 %v2240_v10, %s1997_s8 }
 0x4b0   : > { %848 = vrot.lane.b32.xlu1 %v2240_v10, %s1996_s15  ;;  %p1909_p11 = pneg %p1908_p3  ;;  %s1910_s15 = sshll.u32 %s2005_s25, 4  ;;  %s1911_s15 = int_to_ptr.vmem [resolvable:$false] %s1910_s15 }
 0x4b1   : > { %p1913_p9 = scmp.lt.s32.totalorder %s2361_s16, %s1911_s15 }
 0x51e   : > { %v740_v60 = vpop.xlane.xlu0 %739 }
 0x51f   : > { %v742_v61 = vsub.f32 %v734_v56, %v740_v60 }
 0x520   : > { %v737_v62 = vpop.xlane.xlu1 %736 }
 0x521   : > { %v745_v63 = vmul.f32 1.442695, %v742_v61  ;;  %v741_v0 = vsub.f32 %v733_v58, %v737_v62 }
 0x522   : > { %v758_v3 = vpop.permute.xlu0 %757 }
 0x523   : > { %1774 = vpow2.f32 %v745_v63  ;;  %v743_v1 = vmul.f32 1.442695, %v741_v0 }
 0x524   : > { %v760_v2 = vpop.permute.xlu1 %759 }
 0x525   : > { %1776 = vpow2.f32 %v743_v1  ;;  %1630 = vmatprep.subr.mxu0 %v760_v2 }
 0x526   : > { %1631 = vmatpush3.msra.mxu0 %v760_v2  ;;  %v845_v18 = vpop.permute.xlu0 %844 }
 0x527   : > { %1632 = vmatprep.subr.mxu0 %v758_v3 }
 0x528   : > { %1633 = vmatpush3.msra.mxu0 %v758_v3  ;;  %v851_v4 = vpop.permute.xlu1 %850 }
 0x529   : > { %1637 = vmatprep.subr.msk.mxu0 %vm435_vm1, %v851_v4 }
 0x52c   : > { %v849_v11 = vpop.permute.xlu1 %848 }
 0x530   : > { %v1775_v5 = vpop.eup %1774 }
 0x531   : > { %v750_v6 = vsel %vm530_vm4, %v1775_v5, 0.0 }
 0x532   : > { %v1777_v7 = vpop.eup %1776  ;;  %751 = vadd.xlane.f32.xlu1 %v750_v6 }
 0x533   : > { %v747_v9 = vsel %vm530_vm4, %v1777_v7, 0.0 }
 0x536   : > { %748 = vadd.xlane.f32.xlu1 %v747_v9 }
 0x547   : > { %846 = vrot.lane.b32.xlu1 %v2238_v8, %s1997_s8  ;;  %s1912_s8 = scalar_lea.vmem %s1911_s15, 512 }
 0x548   : > { %p1914_p13 = scmp.lt.s32.totalorder %s1912_s8, %s1906_s13 }
 0x54a   : > { %p1915_p1 = por %p1914_p13, %p1913_p9 }
 0x54c   : > { %p1916_p4 = pnand %p1915_p1, %p1909_p11 }
 0x5bb   : > { %v752_v12 = vpop.xlane.xlu1 %751 }
 0x5bc   : > { %1778 = vrcp.f32 %v752_v12 }
 0x5bf   : > { %v749_v13 = vpop.xlane.xlu1 %748 }
 0x5c0   : > { %1780 = vrcp.f32 %v749_v13 }
 0x5c3   : > { %v847_v19 = vpop.permute.xlu1 %846 }
 0x5c9   : > { %v1779_v14 = vpop.eup %1778 }
 0x5ca   : > { %v756_v17 = vmul.f32 %v1779_v14, %v1775_v5 }
 0x5cd   : > { %v1781_v15 = vpop.eup %1780 }
 0x5ce   : > { %v754_v16 = vmul.f32 %v1781_v15, %v1777_v7 }
 0x5d0   : > { %1634 = vmatprep.mubr.msk.f32.mxu0 %vm530_vm4, %v754_v16 }
 0x5d1   : > { %1635 = vmatmul.mubr.msk.f32.vlgmr.msra.gmra.mxu0 %vm530_vm4, %v756_v17 }
 0x5d2   : > { %1638 = vmatpush3.xpose.msk.msra.mxu0 %vm435_vm1, %v851_v4  ;;  %1641 = vmatprep.mubr.msk.f32.mxu0 %vm435_vm1, %v845_v18 }
 0x5d3   : > { %1639 = vmatprep.subr.msk.mxu0 %vm435_vm1, %v849_v11 }
 0x5d6   : > { %1640 = vmatpush3.xpose.msk.msra.mxu0 %vm435_vm1, %v849_v11 }
 0x5d9   : > { %1642 = vmatmul.mubr.msk.f32.vlgmr.msra.gmra.mxu0 %vm435_vm1, %v847_v19  ;;  %v1286_v19 = vld [vmem:[#allocation8 + $0x18] sm:$0xff] }
 0x691   : > { %v2305_v21 = vpop.f32.mrf.mxu0 }
 0x693   : > { %v2307_v22 = vpop.f32.mrf.mxu0 }
 0x699   : > { %v1643_v23 = vpop.f32.mrf.mxu0 }
 0x69a   : > { %v936_v24 = vmul.f32 0.17677669, %v1643_v23 }
 0x69b   : > { %v926_v25 = vpop.f32.mrf.mxu0 }
 0x69c   : > { %v935_v26 = vmul.f32 0.17677669, %v926_v25  ;;  %v938_v27 = vsel %vm527_vm3, -1e+09, %v936_v24 }
 0x69d   : > { %v942_v28 = vsel %vm530_vm4, %v938_v27, -inf }
 0x69e   : > { %943 = vmax.xlane.f32.xlu1 %v942_v28  ;;  %v937_v29 = vsel %vm527_vm3, -1e+09, %v935_v26 }
 0x69f   : > { %v939_v30 = vsel %vm530_vm4, %v937_v29, -inf }
 0x6a0   : > { %940 = vmax.xlane.f32.xlu0 %v939_v30 }
 0x6af   : > { %963 = vrot.lane.b32.xlu1 %v2238_v8, %s1998_s17 }
 0x6b3   : > { %1054 = vrot.lane.b32.xlu1 %v2238_v8, %s1999_s0 }
 0x6b7   : > { %1052 = vrot.lane.b32.xlu1 %v2240_v10, %s1999_s0 }
 0x6bb   : > { %1050 = vrot.lane.b32.xlu1 %v2238_v8, %s2000_s12 }
 0x727   : > { %v944_v31 = vpop.xlane.xlu1 %943 }
 0x728   : > { %v946_v32 = vsub.f32 %v938_v27, %v944_v31 }
 0x729   : > { %v941_v33 = vpop.xlane.xlu0 %940 }
 0x72a   : > { %v949_v34 = vmul.f32 1.442695, %v946_v32  ;;  %v945_v35 = vsub.f32 %v937_v29, %v941_v33 }
 0x72b   : > { %v964_v36 = vpop.permute.xlu1 %963 }
 0x72c   : > { %1782 = vpow2.f32 %v949_v34  ;;  %v947_v37 = vmul.f32 1.442695, %v945_v35  ;;  %1644 = vmatprep.subr.mxu1 %v964_v36 }
 0x72d   : > { %1645 = vmatpush3.msra.mxu1 %v964_v36 }
 0x72e   : > { %1784 = vpow2.f32 %v947_v37 }
 0x72f   : > { %v1055_v45 = vpop.permute.xlu1 %1054 }
 0x733   : > { %v1053_v53 = vpop.permute.xlu1 %1052 }
 0x737   : > { %v1051_v54 = vpop.permute.xlu1 %1050 }
 0x739   : > { %v1783_v38 = vpop.eup %1782 }
 0x73a   : > { %v954_v39 = vsel %vm530_vm4, %v1783_v38, 0.0 }
 0x73b   : > { %v1785_v40 = vpop.eup %1784  ;;  %955 = vadd.xlane.f32.xlu0 %v954_v39 }
 0x73c   : > { %v951_v41 = vsel %vm530_vm4, %v1785_v40, 0.0 }
 0x73f   : > { %952 = vadd.xlane.f32.xlu0 %v951_v41 }
 0x755   : > { %961 = vrot.lane.b32.xlu0 %v2240_v10, %s1998_s17 }
 0x759   : > { %1048 = vrot.lane.b32.xlu0 %v2240_v10, %s2000_s12 }
 0x7c4   : > { %v956_v42 = vpop.xlane.xlu0 %955 }
 0x7c5   : > { %1786 = vrcp.f32 %v956_v42 }
 0x7c8   : > { %v953_v43 = vpop.xlane.xlu0 %952 }
 0x7c9   : > { %1788 = vrcp.f32 %v953_v43 }
 0x7cc   : > { %v962_v44 = vpop.permute.xlu0 %961 }
 0x7cd   : > { %1646 = vmatprep.subr.mxu1 %v962_v44 }
 0x7ce   : > { %1647 = vmatpush3.msra.mxu1 %v962_v44 }
 0x7cf   : > { %1651 = vmatprep.subr.msk.mxu1 %vm435_vm1, %v1055_v45 }
 0x7d0   : > { %v1049_v52 = vpop.permute.xlu0 %1048 }
 0x7d2   : > { %v1787_v46 = vpop.eup %1786 }
 0x7d3   : > { %v960_v49 = vmul.f32 %v1787_v46, %v1783_v38 }
 0x7d6   : > { %v1789_v47 = vpop.eup %1788 }
 0x7d7   : > { %v958_v48 = vmul.f32 %v1789_v47, %v1785_v40 }
 0x7d9   : > { %1648 = vmatprep.mubr.msk.f32.mxu1 %vm530_vm4, %v958_v48 }
 0x7da   : > { %1649 = vmatmul.mubr.msk.f32.vlgmr.msra.gmra.mxu1 %vm530_vm4, %v960_v49 }
 0x7db   : > { %1652 = vmatpush3.xpose.msk.msra.mxu1 %vm435_vm1, %v1055_v45  ;;  %1655 = vmatprep.mubr.msk.f32.mxu1 %vm435_vm1, %v1049_v52 }
 0x7dc   : > { %1653 = vmatprep.subr.msk.mxu1 %vm435_vm1, %v1053_v53 }
 0x7df   : > { %1654 = vmatpush3.xpose.msk.msra.mxu1 %vm435_vm1, %v1053_v53 }
 0x7e2   : > { %1656 = vmatmul.mubr.msk.f32.vlgmr.msra.gmra.mxu1 %vm435_vm1, %v1051_v54 }
 0x89a   : > { %v1650_v55 = vpop.f32.mrf.mxu1 }
 0x89c   : > { %v1039_v56 = vpop.f32.mrf.mxu1 }
 0x8a2   : > { %v1657_v57 = vpop.f32.mrf.mxu1 }
 0x8a3   : > { %v1140_v58 = vmul.f32 0.17677669, %v1657_v57 }
 0x8a4   : > { %v1130_v59 = vpop.f32.mrf.mxu1 }
 0x8a5   : > { %v1139_v60 = vmul.f32 0.17677669, %v1130_v59  ;;  %v1142_v61 = vsel %vm527_vm3, -1e+09, %v1140_v58 }
 0x8a6   : > { %v1146_v62 = vsel %vm530_vm4, %v1142_v61, -inf }
 0x8a7   : > { %1147 = vmax.xlane.f32.xlu1 %v1146_v62  ;;  %v1141_v63 = vsel %vm527_vm3, -1e+09, %v1139_v60 }
 0x8a8   : > { %v1143_v0 = vsel %vm530_vm4, %v1141_v63, -inf }
 0x8a9   : > { %1144 = vmax.xlane.f32.xlu0 %v1143_v0 }
 0x8b8   : > { %1167 = vrot.lane.b32.xlu1 %v2238_v8, %s2001_s23 }
 0x8bc   : > { %1254 = vrot.lane.b32.xlu1 %v2307_v22, %s2002_s11  ;;  %v1283_v22 = vld [vmem:[#allocation8] sm:$0xff] }
 0x8c0   : > { %1256 = vrot.lane.b32.xlu1 %v2305_v21, %s2002_s11  ;;  %v1285_v21 = vld [vmem:[#allocation8 + $0x10] sm:$0xff] }
 0x8c4   : > { %1264 = vrot.lane.b32.xlu1 %v1650_v55, %s2003_s14 }
 0x930   : > { %v1148_v1 = vpop.xlane.xlu1 %1147 }
 0x931   : > { %v1150_v2 = vsub.f32 %v1142_v61, %v1148_v1 }
 0x932   : > { %v1145_v3 = vpop.xlane.xlu0 %1144 }
 0x933   : > { %v1153_v20 = vmul.f32 1.442695, %v1150_v2  ;;  %v1149_v4 = vsub.f32 %v1141_v63, %v1145_v3 }
 0x934   : > { %v1168_v5 = vpop.permute.xlu1 %1167 }
 0x935   : > { %1790 = vpow2.f32 %v1153_v20  ;;  %v1151_v6 = vmul.f32 1.442695, %v1149_v4  ;;  %1658 = vmatprep.subr.mxu0 %v1168_v5 }
 0x936   : > { %1659 = vmatpush3.msra.mxu0 %v1168_v5 }
 0x937   : > { %1792 = vpow2.f32 %v1151_v6 }
 0x938   : > { %v1255_v25 = vpop.permute.xlu1 %1254 }
 0x939   : > { %v1276_v29 = vsel %vm435_vm1, %v2281_v51, %v1255_v25  ;;  %v1544_v51 = vld [vmem:[%s2417_s5] ss:$0 sm:$0xff] }
 0x93c   : > { %v1257_v26 = vpop.permute.xlu1 %1256 }
 0x93d   : > { %v1277_v31 = vsel %vm435_vm1, %v2279_v50, %v1257_v26 }
 0x940   : > { %v1265_v27 = vpop.permute.xlu1 %1264 }
 0x941   : > { %v1279_v34 = vsel %vm530_vm4, %v1277_v31, %v1265_v27 }
 0x942   : > { %v1791_v8 = vpop.eup %1790 }
 0x943   : > { %v1158_v7 = vsel %vm530_vm4, %v1791_v8, 0.0 }
 0x944   : > { %v1793_v9 = vpop.eup %1792  ;;  %1159 = vadd.xlane.f32.xlu0 %v1158_v7 }
 0x945   : > { %v1155_v11 = vsel %vm530_vm4, %v1793_v9, 0.0 }
 0x948   : > { %1156 = vadd.xlane.f32.xlu0 %v1155_v11 }
 0x95e   : > { %1165 = vrot.lane.b32.xlu0 %v2240_v10, %s2001_s23  ;;  %v1284_v10 = vld [vmem:[#allocation8 + $0x8] sm:$0xff] }
 0x962   : > { %1262 = vrot.lane.b32.xlu0 %v1039_v56, %s2003_s14 }
 0x9cd   : > { %v1160_v12 = vpop.xlane.xlu0 %1159 }
 0x9ce   : > { %1794 = vrcp.f32 %v1160_v12 }
 0x9d1   : > { %v1157_v13 = vpop.xlane.xlu0 %1156 }
 0x9d2   : > { %1796 = vrcp.f32 %v1157_v13 }
 0x9d5   : > { %v1166_v14 = vpop.permute.xlu0 %1165 }
 0x9d6   : > { %1660 = vmatprep.subr.mxu0 %v1166_v14 }
 0x9d7   : > { %1661 = vmatpush3.msra.mxu0 %v1166_v14 }
 0x9d8   : > { %1665 = vmatprep.subr.mxu0 %v1286_v19 }
 0x9d9   : > { %v1263_v28 = vpop.permute.xlu0 %1262 }
 0x9da   : > { %v1278_v32 = vsel %vm530_vm4, %v1276_v29, %v1263_v28 }
 0x9db   : > { %v1795_v15 = vpop.eup %1794 }
 0x9dc   : > { %v1164_v18 = vmul.f32 %v1795_v15, %v1791_v8 }
 0x9df   : > { %v1797_v16 = vpop.eup %1796 }
 0x9e0   : > { %v1162_v17 = vmul.f32 %v1797_v16, %v1793_v9 }
 0x9e2   : > { %1662 = vmatprep.mubr.msk.f32.mxu0 %vm530_vm4, %v1162_v17 }
 0x9e3   : > { %1663 = vmatmul.mubr.msk.f32.vlgmr.msra.gmra.mxu0 %vm530_vm4, %v1164_v18 }
 0x9e4   : > { %1666 = vmatpush3.msra.mxu0 %v1286_v19 }
 0x9e5   : > { %1667 = vmatprep.subr.mxu0 %v1285_v21 }
 0x9e6   : > { %1668 = vmatpush3.msra.mxu0 %v1285_v21 }
 0x9e7   : > { %1669 = vmatprep.subr.mxu0 %v1284_v10 }
 0x9e8   : > { %1670 = vmatpush3.msra.mxu0 %v1284_v10 }
 0x9e9   : > { %1671 = vmatprep.subr.mxu0 %v1283_v22 }
 0x9ea   : > { %1672 = vmatpush3.msra.mxu0 %v1283_v22 }
 0xaa3   : > { %v1664_v23 = vpop.f32.mrf.mxu0 }
 0xaa4   : > { %1272 = vrot.lane.b32.xlu1 %v1664_v23, %s2004_s2 }
 0xaa5   : > { %v1243_v24 = vpop.f32.mrf.mxu0 }
 0xaa6   : > { %1270 = vrot.lane.b32.xlu0 %v1243_v24, %s2004_s2 }
 0xb16   : > { %v1273_v30 = vpop.permute.xlu1 %1272 }
 0xb17   : > { %v1282_v36 = vsel %vm1280_vm5, %v1279_v34, %v1273_v30 }
 0xb18   : > { %v1271_v33 = vpop.permute.xlu0 %1270 }
 0xb19   : > { %v1281_v35 = vsel %vm1280_vm5, %v1278_v32, %v1271_v33 }
 0xb1a   : > { %1673 = vmatprep.mubr.msk.f32.mxu0 %vm347_vm0, %v1281_v35 }
 0xb1b   : > { %1674 = vmatmul.mubr.msk.f32.vlgmr.msra.gmra.mxu0 %vm347_vm0, %v1282_v36 }
 0xbdb   : > { %v1675_v50 = vpop.f32.mrf.mxu0 }
 0xbdc   : > { %v1372_v37 = vadd.f32 %v1675_v50, %v1544_v51 }
 0xbdd   : > { %v1366_v38 = vpop.f32.mrf.mxu0 }
 0xbde   : > { %1376 = vst.msk [vmem:[%s332_s27 + $0x8] sm:$0xff] %vm347_vm0, %v1372_v37  ;;  %v1367_v39 = vadd.f32 %v1544_v51, %v1366_v38 }
 0xbe0   : > { %1375 = vst.msk [vmem:[%s332_s27] sm:$0xff] %vm347_vm0, %v1367_v39 }
 0xbe1   : > { %1919 = shalt.err (!%p1916_p4)
}
 0xbe2   : > { %s1920_s17 = scalar_lea.hbm %s2367_s10, 256  ;;  %s1924_s23 = scalar_lea.hbm %s2418_s6, 512 }
 0xbe3   : > { %p1921_p6 = scmp.ne.s32.totalorder %s2367_s10, %s1920_s17  ;;  %p1925_p2 = scmp.lt.s32.totalorder %s2367_s10, %s2418_s6 }
 0xbe4   : > { %p1926_p5 = scmp.lt.s32.totalorder %s1924_s23, %s1920_s17 }
 0xbe5   : > { %p1922_p7 = pnand %p1921_p6, %p2448_p10 }
 0xbe6   : > { %p1927_p12 = por %p1926_p5, %p1925_p2 }
 0xbe7   : > { %p1923_p8 = pneg %p1922_p7 }
 0xbe9   : > { %p1928_p0 = pnand %p1927_p12, %p1923_p8 }
 0xbeb   : > { %1931 = shalt.err (!%p1928_p0)
}
 0xbec   : > { %s2006_s29 = smov 128  }
 0xbed   : > { %1688 = dma.vmem_to_hbm [thread:$0]  (%p2448_p10), %s2361_s16, 256, %s2367_s10, %s1378_s7, %s2006_s29, %s2006_s29, %s2002_s11  }
 0xbee PF: > { %s1406_s18 = sand.u32 1, %s1970_s21   ;;  %p2449_p3 = scmp.ne.s32.totalorder %s2430_s28, 0 }
 0xbef   : > { %p2450_p11 = scmp.ge.s32.totalorder %s1982_s24, 2  ;;  %s1407_s27 = scalar_lea.sflag [#allocation4], %s1406_s18 }
 0xbf1   : > { %p1705_p9 = pnand %p2450_p11, %p2449_p3 }
 0xbf3   : > { %p1706_p13 = pneg %p1705_p9 }
 0xbf5   : > { %1965 = dma.done.wait (%p1706_p13), %s1407_s27, 256  }
 0xbf6   : > { %1967 = vsyncadd (%p1706_p13), %s1407_s27, 4294967040  ;;  %s2451_s30 = sld [smem:[#allocation16_spill]]  ;;  %p23_p1 = scmp.ge.s32.totalorder %s2120_s19, 4  }
 0xbf7   : > { %s2452_s23 = sld [smem:[#allocation17_spill]]  ;;  %s2453_s21 = smov %s1974_s22 }
 0xbf8   : > { %s2455_s24 = smov %s2120_s19  ;;  %25 = sbr.rel (!%p23_p1) target bundleno = 12 (0xc), region = 110 }
 0xbfc   : > { %s2454_s22 = smov %s2451_s30 }
 0xbfd   :  { %1412 = vsyncpa [#allocation3], 1 }
 0xbfe   :  { %1414 = vsyncpa [#allocation3 + $0x1], 1 }
 0xbff   :  { %1415 = vsyncpa [#allocation6], 1 }
 0xc00   :  { %1417 = vsyncpa [#allocation6 + $0x1], 1 }
 0xc01   :  { %1418 = vsyncpa [#allocation9], 1 }
 0xc02   :  { %1419 = vsyncpa [#allocation4], 1 }
 0xc03   :  { %1421 = vsyncpa [#allocation4 + $0x1], 1 }

</bundles_post_ra>
